<compile_context>
chip_gen: v5e
topology: v5e:2x2
jax: 0.10.0
libtpu: 0.0.40
codegen_flags: <defaults>
</compile_context>

<pallas_src>
import functools
import math

import jax
import jax.numpy as jnp
from jax import lax
from jax.experimental import pallas as pl
from jax.experimental.pallas import tpu as pltpu

BN_EPS = 1e-5   # torch.nn.BatchNorm1d default eps
LANE = 128      # TPU lane width
SUBLANE = 8     # f32 sublane tile


def _round_up(x, m):
    return (x + m - 1) // m * m


def _fused_kernel(x_ref, pw_ref, sw_ref, mw_ref, lw_ref, b_ref, out_ref, *,
                  seq_len):
    """Fused encoder + joint MLP + logits; everything resident in VMEM/vregs.

    x_ref : (2*Bp*L, E)     stacked embedded premise||hypothesis tokens (cd)
    pw_ref: (E, Hp)         projection weight, H padded to lanes (cd)
    sw_ref: (2, Hp, Jp)     shared-block weight split into premise / hypothesis
                            row halves, encoder-BN scale folded in (cd)
    mw_ref: (nb, Jp, Jp)    mode-block weights, previous BN folded in (cd)
    lw_ref: (Jp, NLp)       logits weight, last BN folded in (cd)
    b_ref : (3+nb, BW) f32  packed biases: [proj, shared, mode..., logits]
    out_ref:(Bp, NLp) f32   padded logits (lane-dense store)
    """
    n_tok = x_ref.shape[0]                 # 2 * Bp * L
    bp = out_ref.shape[0]                  # padded batch
    groups = 2 * bp                        # premise rows, then hypothesis rows
    cd = pw_ref.dtype                      # matmul compute dtype (f32 or bf16)
    hp = pw_ref.shape[1]
    jp = sw_ref.shape[2]
    nlp = lw_ref.shape[1]
    nb = mw_ref.shape[0]

    # --- projection + ReLU for premise AND hypothesis tokens in one matmul --
    h = jnp.dot(x_ref[...], pw_ref[...], preferred_element_type=jnp.float32)
    h = jnp.maximum(h + b_ref[0:1, :hp], 0.0)            # (2*Bp*L, Hp) f32

    # --- per-example sum over the sequence axis, pushed onto the MXU --------
    # Block-diagonal ones matrix: seg[g, t] = 1 iff token t belongs to group g.
    # TODO(synk): at realistic B*L replace this (O(B^2*L) memory, mostly-zero
    # matmul) with a token-tile reduction grid axis accumulating ReLU(proj)
    # into an f32 VMEM scratch (pl.when init at step 0).
    row = lax.broadcasted_iota(jnp.int32, (groups, n_tok), 0)
    col = lax.broadcasted_iota(jnp.int32, (groups, n_tok), 1)
    mask = (col >= row * seq_len) & (col < (row + 1) * seq_len)
    seg = jnp.where(mask, 1.0, 0.0).astype(cd)
    sums = jnp.dot(seg, h.astype(cd),
                   preferred_element_type=jnp.float32)    # (2*Bp, Hp)

    # --- shared block: Linear + ReLU (Dropout=id, BN scales pre-folded) -----
    # concat(prem, hyp) @ W  ==  prem @ W_top + hyp @ W_bot, so no lane-padded
    # 2*Hp joint is ever formed (block width is Jp = round_up(2H, 128)).
    sums_cd = sums.astype(cd)
    x = (jnp.dot(sums_cd[:bp], sw_ref[0], preferred_element_type=jnp.float32)
         + jnp.dot(sums_cd[bp:], sw_ref[1], preferred_element_type=jnp.float32))
    x = jnp.maximum(x + b_ref[1:2, :jp], 0.0)

    # --- mode-specific blocks (static unroll) --------------------------------
    for i in range(nb):
        xi = jnp.dot(x.astype(cd), mw_ref[i],
                     preferred_element_type=jnp.float32)
        x = jnp.maximum(xi + b_ref[2 + i:3 + i, :jp], 0.0)

    # --- logits (lane-dense padded f32 store) ---------------------------------
    out_ref[...] = (jnp.dot(x.astype(cd), lw_ref[...],
                            preferred_element_type=jnp.float32)
                    + b_ref[2 + nb:3 + nb, :nlp])


def prepare_params(params, mode, *, compute_dtype=jnp.bfloat16):
    """One-time layout / constant-folding prep (NOT per forward call).

    * eval BatchNorm1d(affine=False) with default running stats (mean=0,
      var=1) is x * 1/sqrt(1+eps); that scale commutes with the following
      Linear layer, so it is folded into sw / mw / lw here and the kernel has
      no per-tensor BN multiplies.
      TODO(synk): if the real module carries trained running stats, fold
      (x - mean) * rsqrt(var + eps) into the next layer's weight AND bias.
    * H is padded to Hp lanes; the concatenated joint width 2H is padded ONCE
      to Jp lanes and the shared weight is split into premise / hypothesis row
      halves, so block matmuls are Jp-wide (128 for H<=64), not 2*Hp-wide.
    * matmul operands are cast to compute_dtype (bf16 default: native MXU fast
      path on v6e/v7x, halves weight+embedding DMA bytes); biases stay f32 and
      are packed into a single small ref (one DMA descriptor).
    """
    if mode not in ("source", "target"):
        raise ValueError("You must set the `mode` for a multi-target model")
    f32 = jnp.float32
    cd = compute_dtype
    e, h = params["proj_w"].shape
    nl = params[f"logits_{mode}_w"].shape[1]
    hp = _round_up(h, LANE)
    jp = _round_up(2 * h, LANE)
    nlp = _round_up(nl, LANE)
    inv_bn = 1.0 / math.sqrt(1.0 + BN_EPS)   # eval BatchNorm1d(affine=False)

    pw = jnp.zeros((e, hp), f32).at[:, :h].set(params["proj_w"]).astype(cd)

    # shared block weight: encoder-BN scale folded in, split prem/hyp halves
    sw_raw = params["shared_w"][0] * inv_bn
    sw = jnp.zeros((2, hp, jp), f32)
    sw = sw.at[0, :h, :2 * h].set(sw_raw[:h])
    sw = sw.at[1, :h, :2 * h].set(sw_raw[h:])
    sw = sw.astype(cd)

    # mode blocks: each absorbs the previous block's BN scale
    mw_raw = params[f"{mode}_w"] * inv_bn
    mb_raw = params[f"{mode}_b"]
    nb = mw_raw.shape[0]
    mw = (jnp.zeros((nb, jp, jp), f32)
          .at[:, :2 * h, :2 * h].set(mw_raw).astype(cd))

    # logits: absorbs the last mode block's BN scale
    lw = (jnp.zeros((jp, nlp), f32)
          .at[:2 * h, :nl].set(params[f"logits_{mode}_w"] * inv_bn).astype(cd))

    # packed f32 biases: row 0 proj, row 1 shared, rows 2..2+nb-1 mode, last logits
    bw = max(hp, jp, nlp)
    biases = jnp.zeros((3 + nb, bw), f32)
    biases = biases.at[0, :h].set(params["proj_b"][0])
    biases = biases.at[1, :2 * h].set(params["shared_b"][0, 0])
    biases = biases.at[2:2 + nb, :2 * h].set(mb_raw[:, 0, :])
    biases = biases.at[2 + nb, :nl].set(params[f"logits_{mode}_b"][0])

    return {
        "W_emb": params["W_emb"].astype(cd),
        "pw": pw, "sw": sw, "mw": mw, "lw": lw, "biases": biases,
        "n_labels": nl, "labels_pad": nlp,
    }


def multi_target_forward(premise_ids, hypothesis_ids, prepared):
    b, l = premise_ids.shape
    bp = _round_up(b, SUBLANE)            # full sublane occupancy
    nlp = prepared["labels_pad"]

    def pad_rows(ids):
        if bp == b:
            return ids
        return jnp.concatenate(
            [ids, jnp.zeros((bp - b, l), ids.dtype)], axis=0)

    # premise rows [0:Bp], hypothesis rows [Bp:2Bp]
    ids_all = jnp.concatenate([pad_rows(premise_ids), pad_rows(hypothesis_ids)],
                              axis=0)
    # TODO(synk): move this gather into the kernel (scalar-prefetch token ids,
    # W_emb in memory_space=pl.ANY, per-token-tile manual DMA gather) to avoid
    # materializing + re-reading the (2Bp, L, E) embedded tensor in HBM.
    emb = jnp.take(prepared["W_emb"], ids_all, axis=0)       # (2Bp, L, E)
    emb = emb.reshape(2 * bp * l, emb.shape[-1])

    # Whole-array VMEM blocks, single launch: everything fits at these sizes.
    # TODO(synk): at non-toy B/L/E add (a) a "parallel" batch grid axis so work
    # shards across v7x's 2 TensorCores, (b) a token-axis BlockSpec tile with an
    # accumulator-based sequence reduction, and (c) explicit
    # pltpu.CompilerParams(vmem_limit_bytes=...) sized with headroom for the
    # double-buffered inputs (v5e 16 MiB / v6e-v7x 32 MiB scoped defaults).
    vmem = pl.BlockSpec(memory_space=pltpu.MemorySpace.VMEM)
    out = pl.pallas_call(
        functools.partial(_fused_kernel, seq_len=l),
        out_shape=jax.ShapeDtypeStruct((bp, nlp), jnp.float32),
        in_specs=[vmem] * 6,
        out_specs=vmem,
    )(emb, prepared["pw"], prepared["sw"], prepared["mw"], prepared["lw"],
      prepared["biases"])
    return out[:b, :prepared["n_labels"]]


def reference_forward(premise_ids, hypothesis_ids, params, mode="source"):
    """Pure-JAX reference matching the PyTorch eval-mode forward."""
    inv = 1.0 / jnp.sqrt(1.0 + BN_EPS)

    def enc(ids):
        x = jnp.take(params["W_emb"], ids, axis=0)
        h = jnp.maximum(x @ params["proj_w"] + params["proj_b"][0], 0.0)
        return h.sum(axis=1) * inv

    joint = jnp.concatenate([enc(premise_ids), enc(hypothesis_ids)], axis=-1)
    ws = jnp.concatenate([params["shared_w"], params[f"{mode}_w"]], axis=0)
    bs = jnp.concatenate([params["shared_b"], params[f"{mode}_b"]], axis=0)
    x = joint
    for i in range(ws.shape[0]):
        x = jnp.maximum(x @ ws[i] + bs[i][0], 0.0) * inv
    return x @ params[f"logits_{mode}_w"] + params[f"logits_{mode}_b"][0]


def init_params(key, vocab_size, emb_dim, hidden, n_labels,
                nb_shared=1, nb_individual=2):
    keys = jax.random.split(key, 16)
    two_h = 2 * hidden
    s = 0.1
    return {
        "W_emb": jax.random.normal(keys[0], (vocab_size, emb_dim), jnp.float32) * s,
        "proj_w": jax.random.normal(keys[1], (emb_dim, hidden), jnp.float32) * s,
        "proj_b": jax.random.normal(keys[2], (1, hidden), jnp.float32) * s,
        "shared_w": jax.random.normal(keys[3], (nb_shared, two_h, two_h), jnp.float32) * s,
        "shared_b": jax.random.normal(keys[4], (nb_shared, 1, two_h), jnp.float32) * s,
        "source_w": jax.random.normal(keys[5], (nb_individual, two_h, two_h), jnp.float32) * s,
        "source_b": jax.random.normal(keys[6], (nb_individual, 1, two_h), jnp.float32) * s,
        "target_w": jax.random.normal(keys[7], (nb_individual, two_h, two_h), jnp.float32) * s,
        "target_b": jax.random.normal(keys[8], (nb_individual, 1, two_h), jnp.float32) * s,
        "logits_source_w": jax.random.normal(keys[9], (two_h, n_labels), jnp.float32) * s,
        "logits_source_b": jax.random.normal(keys[10], (1, n_labels), jnp.float32) * s,
        "logits_target_w": jax.random.normal(keys[11], (two_h, n_labels), jnp.float32) * s,
        "logits_target_b": jax.random.normal(keys[12], (1, n_labels), jnp.float32) * s,
    }


if __name__ == "__main__":
    key = jax.random.PRNGKey(0)
    k_ids_p, k_ids_h, k_params = jax.random.split(key, 3)

    # Small shapes: batch=4, seq(max_len)=8, vocab=50, emb_dim=16, hidden=32,
    # len(LABELS)=3.
    B, L, V, E, H, NL = 4, 8, 50, 16, 32, 3

    params = init_params(k_params, V, E, H, NL)
    premise_ids = jax.random.randint(k_ids_p, (B, L), 0, V, dtype=jnp.int32)
    hypothesis_ids = jax.random.randint(k_ids_h, (B, L), 0, V, dtype=jnp.int32)

    checks = [
        ("source", jnp.float32, 1e-4, 1e-4),    # exact f32 path (verification)
        ("source", jnp.bfloat16, 5e-2, 5e-2),   # default bf16-operand path
        ("target", jnp.bfloat16, 5e-2, 5e-2),
    ]
    for mode, cd, atol, rtol in checks:
        ref = reference_forward(premise_ids, hypothesis_ids, params, mode=mode)
        prep = prepare_params(params, mode, compute_dtype=cd)
        fwd = jax.jit(functools.partial(multi_target_forward, prepared=prep))
        out = jax.block_until_ready(fwd(premise_ids, hypothesis_ids))
        assert out.shape == (B, NL), out.shape
        assert jnp.allclose(out, ref, atol=atol, rtol=rtol), (
            f"mismatch mode={mode} dtype={cd}: {out} vs {ref}")

    print("KERNEL_OK")
</pallas_src>

<mosaic_0001>
module attributes {stable_mosaic.version = 11 : i64} {
  func.func @_fused_kernel(%arg0: memref<128x16xf32, #tpu.memory_space<vmem>>, %arg1: memref<16x128xf32, #tpu.memory_space<vmem>>, %arg2: memref<2x128x128xf32, #tpu.memory_space<vmem>>, %arg3: memref<2x128x128xf32, #tpu.memory_space<vmem>>, %arg4: memref<128x128xf32, #tpu.memory_space<vmem>>, %arg5: memref<5x128xf32, #tpu.memory_space<vmem>>, %arg6: memref<8x128xf32, #tpu.memory_space<vmem>>) attributes {dimension_semantics = [], scalar_prefetch = 0 : i64, scratch_operands = 0 : i64, tpu.core_type = #tpu.core_type<tc>} {
    %c0 = arith.constant 0 : index
    %c0_0 = arith.constant 0 : index
    %0 = vector.load %arg0[%c0, %c0_0] : memref<128x16xf32, #tpu.memory_space<vmem>>, vector<128x16xf32>
    %c0_1 = arith.constant 0 : index
    %c0_2 = arith.constant 0 : index
    %1 = vector.load %arg1[%c0_1, %c0_2] : memref<16x128xf32, #tpu.memory_space<vmem>>, vector<16x128xf32>
    %cst = arith.constant dense<0.000000e+00> : vector<128x128xf32>
    %2 = tpu.matmul %0, %1, %cst {dimension_numbers = #tpu.dot_dimension_numbers<[1], [0], [0], [1], [0, 0, 1, 1], [], []>} : vector<128x16xf32>, vector<16x128xf32>, vector<128x128xf32> -> vector<128x128xf32>
    %c0_3 = arith.constant 0 : index
    %c0_4 = arith.constant 0 : index
    %3 = vector.load %arg5[%c0_3, %c0_4] : memref<5x128xf32, #tpu.memory_space<vmem>>, vector<1x128xf32>
    %4 = vector.broadcast %3 : vector<1x128xf32> to vector<128x128xf32>
    %5 = arith.addf %2, %4 : vector<128x128xf32>
    %cst_5 = arith.constant 0.000000e+00 : f32
    %6 = vector.broadcast %cst_5 : f32 to vector<128x128xf32>
    %7 = arith.maximumf %5, %6 : vector<128x128xf32>
    %8 = tpu.iota {dimensions = array<i32: 0>} : vector<16x128xi32>
    %9 = tpu.iota {dimensions = array<i32: 1>} : vector<16x128xi32>
    %c8_i32 = arith.constant 8 : i32
    %10 = vector.broadcast %c8_i32 : i32 to vector<16x128xi32>
    %11 = arith.muli %8, %10 : vector<16x128xi32>
    %12 = arith.cmpi sge, %9, %11 : vector<16x128xi32>
    %c1_i32 = arith.constant 1 : i32
    %13 = vector.broadcast %c1_i32 : i32 to vector<16x128xi32>
    %14 = arith.addi %8, %13 : vector<16x128xi32>
    %c8_i32_6 = arith.constant 8 : i32
    %15 = vector.broadcast %c8_i32_6 : i32 to vector<16x128xi32>
    %16 = arith.muli %14, %15 : vector<16x128xi32>
    %17 = arith.cmpi slt, %9, %16 : vector<16x128xi32>
    %18 = arith.andi %12, %17 : vector<16x128xi1>
    %cst_7 = arith.constant 1.000000e+00 : f32
    %cst_8 = arith.constant 0.000000e+00 : f32
    %19 = vector.broadcast %cst_7 : f32 to vector<16x128xf32>
    %20 = vector.broadcast %cst_8 : f32 to vector<16x128xf32>
    %21 = arith.select %18, %19, %20 : vector<16x128xi1>, vector<16x128xf32>
    %cst_9 = arith.constant dense<0.000000e+00> : vector<16x128xf32>
    %22 = tpu.matmul %21, %7, %cst_9 {dimension_numbers = #tpu.dot_dimension_numbers<[1], [0], [0], [1], [0, 0, 1, 1], [], []>} : vector<16x128xf32>, vector<128x128xf32>, vector<16x128xf32> -> vector<16x128xf32>
    %23 = vector.extract_strided_slice %22 {offsets = [0, 0], sizes = [8, 128], strides = [1, 1]} : vector<16x128xf32> to vector<8x128xf32>
    %c0_10 = arith.constant 0 : index
    %c0_11 = arith.constant 0 : index
    %c0_12 = arith.constant 0 : index
    %24 = vector.load %arg2[%c0_10, %c0_11, %c0_12] : memref<2x128x128xf32, #tpu.memory_space<vmem>>, vector<1x128x128xf32>
    %25 = vector.shape_cast %24 : vector<1x128x128xf32> to vector<128x128xf32>
    %cst_13 = arith.constant dense<0.000000e+00> : vector<8x128xf32>
    %26 = tpu.matmul %23, %25, %cst_13 {dimension_numbers = #tpu.dot_dimension_numbers<[1], [0], [0], [1], [0, 0, 1, 1], [], []>} : vector<8x128xf32>, vector<128x128xf32>, vector<8x128xf32> -> vector<8x128xf32>
    %27 = vector.extract_strided_slice %22 {offsets = [8, 0], sizes = [8, 128], strides = [1, 1]} : vector<16x128xf32> to vector<8x128xf32>
    %c1 = arith.constant 1 : index
    %c0_14 = arith.constant 0 : index
    %c0_15 = arith.constant 0 : index
    %28 = vector.load %arg2[%c1, %c0_14, %c0_15] : memref<2x128x128xf32, #tpu.memory_space<vmem>>, vector<1x128x128xf32>
    %29 = vector.shape_cast %28 : vector<1x128x128xf32> to vector<128x128xf32>
    %cst_16 = arith.constant dense<0.000000e+00> : vector<8x128xf32>
    %30 = tpu.matmul %27, %29, %cst_16 {dimension_numbers = #tpu.dot_dimension_numbers<[1], [0], [0], [1], [0, 0, 1, 1], [], []>} : vector<8x128xf32>, vector<128x128xf32>, vector<8x128xf32> -> vector<8x128xf32>
    %31 = arith.addf %26, %30 : vector<8x128xf32>
    %c1_17 = arith.constant 1 : index
    %c0_18 = arith.constant 0 : index
    %32 = vector.load %arg5[%c1_17, %c0_18] : memref<5x128xf32, #tpu.memory_space<vmem>>, vector<1x128xf32>
    %33 = vector.broadcast %32 : vector<1x128xf32> to vector<8x128xf32>
    %34 = arith.addf %31, %33 : vector<8x128xf32>
    %cst_19 = arith.constant 0.000000e+00 : f32
    %35 = vector.broadcast %cst_19 : f32 to vector<8x128xf32>
    %36 = arith.maximumf %34, %35 : vector<8x128xf32>
    %c0_20 = arith.constant 0 : index
    %c0_21 = arith.constant 0 : index
    %c0_22 = arith.constant 0 : index
    %37 = vector.load %arg3[%c0_20, %c0_21, %c0_22] : memref<2x128x128xf32, #tpu.memory_space<vmem>>, vector<1x128x128xf32>
    %38 = vector.shape_cast %37 : vector<1x128x128xf32> to vector<128x128xf32>
    %cst_23 = arith.constant dense<0.000000e+00> : vector<8x128xf32>
    %39 = tpu.matmul %36, %38, %cst_23 {dimension_numbers = #tpu.dot_dimension_numbers<[1], [0], [0], [1], [0, 0, 1, 1], [], []>} : vector<8x128xf32>, vector<128x128xf32>, vector<8x128xf32> -> vector<8x128xf32>
    %c2 = arith.constant 2 : index
    %c0_24 = arith.constant 0 : index
    %40 = vector.load %arg5[%c2, %c0_24] : memref<5x128xf32, #tpu.memory_space<vmem>>, vector<1x128xf32>
    %41 = vector.broadcast %40 : vector<1x128xf32> to vector<8x128xf32>
    %42 = arith.addf %39, %41 : vector<8x128xf32>
    %cst_25 = arith.constant 0.000000e+00 : f32
    %43 = vector.broadcast %cst_25 : f32 to vector<8x128xf32>
    %44 = arith.maximumf %42, %43 : vector<8x128xf32>
    %c1_26 = arith.constant 1 : index
    %c0_27 = arith.constant 0 : index
    %c0_28 = arith.constant 0 : index
    %45 = vector.load %arg3[%c1_26, %c0_27, %c0_28] : memref<2x128x128xf32, #tpu.memory_space<vmem>>, vector<1x128x128xf32>
    %46 = vector.shape_cast %45 : vector<1x128x128xf32> to vector<128x128xf32>
    %cst_29 = arith.constant dense<0.000000e+00> : vector<8x128xf32>
    %47 = tpu.matmul %44, %46, %cst_29 {dimension_numbers = #tpu.dot_dimension_numbers<[1], [0], [0], [1], [0, 0, 1, 1], [], []>} : vector<8x128xf32>, vector<128x128xf32>, vector<8x128xf32> -> vector<8x128xf32>
    %c3 = arith.constant 3 : index
    %c0_30 = arith.constant 0 : index
    %48 = vector.load %arg5[%c3, %c0_30] : memref<5x128xf32, #tpu.memory_space<vmem>>, vector<1x128xf32>
    %49 = vector.broadcast %48 : vector<1x128xf32> to vector<8x128xf32>
    %50 = arith.addf %47, %49 : vector<8x128xf32>
    %cst_31 = arith.constant 0.000000e+00 : f32
    %51 = vector.broadcast %cst_31 : f32 to vector<8x128xf32>
    %52 = arith.maximumf %50, %51 : vector<8x128xf32>
    %c0_32 = arith.constant 0 : index
    %c0_33 = arith.constant 0 : index
    %53 = vector.load %arg4[%c0_32, %c0_33] : memref<128x128xf32, #tpu.memory_space<vmem>>, vector<128x128xf32>
    %cst_34 = arith.constant dense<0.000000e+00> : vector<8x128xf32>
    %54 = tpu.matmul %52, %53, %cst_34 {dimension_numbers = #tpu.dot_dimension_numbers<[1], [0], [0], [1], [0, 0, 1, 1], [], []>} : vector<8x128xf32>, vector<128x128xf32>, vector<8x128xf32> -> vector<8x128xf32>
    %c4 = arith.constant 4 : index
    %c0_35 = arith.constant 0 : index
    %55 = vector.load %arg5[%c4, %c0_35] : memref<5x128xf32, #tpu.memory_space<vmem>>, vector<1x128xf32>
    %56 = vector.broadcast %55 : vector<1x128xf32> to vector<8x128xf32>
    %57 = arith.addf %54, %56 : vector<8x128xf32>
    %c0_36 = arith.constant 0 : index
    %c0_37 = arith.constant 0 : index
    %58 = vector.load %arg6[%c0_36, %c0_37] : memref<8x128xf32, #tpu.memory_space<vmem>>, vector<8x128xf32>
    tpu.vector_store %arg6[%c0_36, %c0_37], %57 {strides = array<i32>} : memref<8x128xf32, #tpu.memory_space<vmem>>, vector<8x128xf32>,
    return
  }
}

</mosaic_0001>

<bundles_post_ra>
// kernel: multi_target_forward.1
= control target key start
LH: loop header
LB: loop body
LE: loop exit
PB: predicated region body
PF: predicated region fallthrough
CT: control target
= control target key end

     0   :  { %vm43_vm0 = vcmask 130048   ;;  %v173_v52 = vlaneseq  ;;  %s877_s1 = inlined_call_operand.vmem [shape: f32[16,128], index: 1, kind: input, shape index: {}]   ;;  %s878_s0 = inlined_call_operand.vmem [shape: f32[128,16], index: 0, kind: input, shape index: {}]   ;;  %s879_s5 = inlined_call_operand.vmem [shape: f32[5,128], index: 5, kind: input, shape index: {}]   ;;  %s880_s2 = inlined_call_operand.vmem [shape: f32[2,128,128], index: 2, kind: input, shape index: {}]   ;;  %s881_s3 = inlined_call_operand.vmem [shape: f32[2,128,128], index: 3, kind: input, shape index: {}]   ;;  %s882_s4 = inlined_call_operand.vmem [shape: f32[128,128], index: 4, kind: input, shape index: {}]   ;;  %s883_s6 = inlined_call_operand.vmem [shape: f32[8,128], index: 6, kind: output, shape index: {}]  }
   0x1   :  { %v40_v0 = vld [vmem:[%s877_s1 + $0x8] sm:$0xff]  ;;  %v39_v1 = vld [vmem:[%s877_s1] sm:$0xff]  ;;  %v33_v3 = vld [vmem:[%s878_s0 + $0x50] sm:$0xff] }
   0x2   :  { %106 = vmatpush.msra.mxu0 %v40_v0  ;;  %v23_v2 = vld [vmem:[%s878_s0] sm:$0xff]  ;;  %464 = vmatpush.msra.mxu1 %v40_v0  ;;  %v37_v4 = vld [vmem:[%s878_s0 + $0x70] sm:$0xff]  ;;  %v24_v5 = vld [vmem:[%s878_s0 + $0x8] sm:$0xff]  ;;  %v174_v62 = vshrl.u32 %v173_v52, 7 }
   0x3   :  { %465 = vmatpush.msra.mxu2 %v40_v0  ;;  %v34_v6 = vld [vmem:[%s878_s0 + $0x58] sm:$0xff]  ;;  %v25_v8 = vld [vmem:[%s878_s0 + $0x10] sm:$0xff]  ;;  %v35_v9 = vld [vmem:[%s878_s0 + $0x60] sm:$0xff] }
   0x4   :  { %107 = vmatpush.msra.mxu0 %v39_v1  ;;  %466 = vmatpush.msra.mxu1 %v39_v1  ;;  %v38_v7 = vld [vmem:[%s878_s0 + $0x78] sm:$0xff]  ;;  %v36_v11 = vld [vmem:[%s878_s0 + $0x68] sm:$0xff]  ;;  %v27_v12 = vld [vmem:[%s878_s0 + $0x20] sm:$0xff] }
   0x5   :  { %414 = vmatmul.msk.f32.vlgmr.msra.gmra.mxu0 %vm43_vm0, %v23_v2  ;;  %424 = vmatmul.msk.f32.vlgmr.msra.gmra.mxu1 %vm43_vm0, %v33_v3  ;;  %v26_v10 = vld [vmem:[%s878_s0 + $0x18] sm:$0xff]  ;;  %v28_v13 = vld [vmem:[%s878_s0 + $0x28] sm:$0xff]  ;;  %v29_v14 = vld [vmem:[%s878_s0 + $0x30] sm:$0xff] }
   0x6   :  { %467 = vmatpush.msra.mxu2 %v39_v1  ;;  %v30_v15 = vld [vmem:[%s878_s0 + $0x38] sm:$0xff]  ;;  %v31_v16 = vld [vmem:[%s878_s0 + $0x40] sm:$0xff]  ;;  %v32_v17 = vld [vmem:[%s878_s0 + $0x48] sm:$0xff] }
   0x7   :  { %428 = vmatmul.msk.f32.vlgmr.msra.gmra.mxu2 %vm43_vm0, %v37_v4  ;;  %v587_v23 = vld [vmem:[%s879_s5] ss:$0 sm:$0xff]  ;;  %v230_v47 = vld [vmem:[%s880_s2 + $0x78] sm:$0xff]  ;;  %v229_v48 = vld [vmem:[%s880_s2 + $0x70] sm:$0xff] }
   0x8   :  { %268 = vmatpush.msra.mxu3 %v230_v47  ;;  %v447_v51 = vld [vmem:[%s880_s2 + $0xf8] sm:$0xff]  ;;  %v228_v53 = vld [vmem:[%s880_s2 + $0x68] sm:$0xff]  ;;  %v446_v54 = vld [vmem:[%s880_s2 + $0xf0] sm:$0xff] }
   0x9   :  { %248 = vmatpush.msrb.mxu2 %v447_v51  ;;  %v445_v57 = vld [vmem:[%s880_s2 + $0xe8] sm:$0xff]  ;;  %v227_v58 = vld [vmem:[%s880_s2 + $0x60] sm:$0xff]  ;;  %v226_v63 = vld [vmem:[%s880_s2 + $0x58] sm:$0xff] }
   0xa   :  { %269 = vmatpush.msra.mxu3 %v229_v48  ;;  %v444_v61 = vld [vmem:[%s880_s2 + $0xe0] sm:$0xff]  ;;  %v443_v2 = vld [vmem:[%s880_s2 + $0xd8] sm:$0xff]  ;;  %v225_v3 = vld [vmem:[%s880_s2 + $0x50] sm:$0xff] }
   0xb   :  { %249 = vmatpush.msrb.mxu2 %v446_v54  ;;  %v432_v47 = vld [vmem:[%s880_s2 + $0x80] sm:$0xff]  ;;  %v307_v48 = vld [vmem:[%s881_s3 + $0x78] sm:$0xff]  ;;  %v301_v54 = vld [vmem:[%s881_s3 + $0x48] sm:$0xff] }
   0xc   :  { %270 = vmatpush.msra.mxu3 %v228_v53  ;;  %v304_v51 = vld [vmem:[%s881_s3 + $0x60] sm:$0xff]  ;;  %v302_v53 = vld [vmem:[%s881_s3 + $0x50] sm:$0xff] }
   0xd   :  { %415 = vmatmul.msk.f32.gmra.mxu0 %vm43_vm0, %v24_v5  ;;  %425 = vmatmul.msk.f32.gmra.mxu1 %vm43_vm0, %v34_v6  ;;  %v442_v6 = vld [vmem:[%s880_s2 + $0xd0] sm:$0xff] }
   0xe   :  { %250 = vmatpush.msrb.mxu2 %v445_v57  ;;  %271 = vmatpush.msra.mxu3 %v227_v58 }
   0xf   :  { %429 = vmatmul.msk.f32.gmra.mxu2 %vm43_vm0, %v38_v7  ;;  %v182_v7 = vadd.s32 1, %v174_v62 }
  0x10   :  { %251 = vmatpush.msrb.mxu2 %v444_v61  ;;  %272 = vmatpush.msra.mxu3 %v226_v63  ;;  %v296_v61 = vld [vmem:[%s881_s3 + $0x20] sm:$0xff]  ;;  %v294_v63 = vld [vmem:[%s881_s3 + $0x10] sm:$0xff] }
  0x12   :  { %252 = vmatpush.msrb.mxu2 %v443_v2  ;;  %273 = vmatpush.msra.mxu3 %v225_v3  ;;  %v463_v2 = vld [vmem:[%s881_s3 + $0xf8] sm:$0xff]  ;;  %v462_v3 = vld [vmem:[%s881_s3 + $0xf0] sm:$0xff] }
  0x14   :  { %253 = vmatpush.msrb.mxu2 %v442_v6  ;;  %v459_v6 = vld [vmem:[%s881_s3 + $0xd8] sm:$0xff] }
  0x15   :  { %416 = vmatmul.msk.f32.gmra.mxu0 %vm43_vm0, %v25_v8  ;;  %426 = vmatmul.msk.f32.gmra.mxu1 %vm43_vm0, %v35_v9  ;;  %v224_v8 = vld [vmem:[%s880_s2 + $0x48] sm:$0xff] }
  0x16   :  { %274 = vmatpush.msra.mxu3 %v224_v8  ;;  %v457_v8 = vld [vmem:[%s881_s3 + $0xc8] sm:$0xff] }
  0x1d   :  { %417 = vmatmul.msk.f32.gmra.mxu0 %vm43_vm0, %v26_v10  ;;  %427 = vmatmul.msk.f32.gmra.mxu1 %vm43_vm0, %v36_v11  ;;  %v441_v11 = vld [vmem:[%s880_s2 + $0xc8] sm:$0xff] }
  0x1e   :  { %254 = vmatpush.msrb.mxu2 %v441_v11  ;;  %v454_v11 = vld [vmem:[%s881_s3 + $0xb0] sm:$0xff] }
  0x25   :  { %418 = vmatmul.msk.f32.gmra.mxu0 %vm43_vm0, %v27_v12  ;;  %v223_v12 = vld [vmem:[%s880_s2 + $0x40] sm:$0xff] }
  0x26   :  { %275 = vmatpush.msra.mxu3 %v223_v12  ;;  %v453_v12 = vld [vmem:[%s881_s3 + $0xa8] sm:$0xff] }
  0x2d   :  { %419 = vmatmul.msk.f32.gmra.mxu0 %vm43_vm0, %v28_v13 }
  0x35   :  { %420 = vmatmul.msk.f32.gmra.mxu0 %vm43_vm0, %v29_v14 }
  0x3d   :  { %421 = vmatmul.msk.f32.gmra.mxu0 %vm43_vm0, %v30_v15  ;;  %v440_v15 = vld [vmem:[%s880_s2 + $0xc0] sm:$0xff] }
  0x3e   :  { %255 = vmatpush.msrb.mxu2 %v440_v15  ;;  %v470_v15 = vld [vmem:[%s879_s5 + $0x1] ss:$0 sm:$0xff] }
  0x45   :  { %422 = vmatmul.msk.f32.gmra.mxu0 %vm43_vm0, %v31_v16  ;;  %v177_v16 = vand.u32 127, %v173_v52  ;;  %v303_v52 = vld [vmem:[%s881_s3 + $0x58] sm:$0xff] }
  0x4d   :  { %423 = vmatmul.msk.f32.gmra.mxu0 %vm43_vm0, %v32_v17  ;;  %v178_v17 = vmul.u32 8, %v174_v62 }
  0x4f   :  { %vm670_vm1 = vcmp.ge.s32.totalorder %v177_v16, %v178_v17 }
  0x82   :  { %v580_v18 = vpop.f32.mrf.mxu0  ;;  %v139_v19 = vpop.f32.mrf.mxu1 }
  0x83   :  { %v140_v36 = vadd.f32 %v587_v23, %v139_v19  ;;  %v184_v19 = vmul.u32 8, %v182_v7  ;;  %v458_v7 = vld [vmem:[%s881_s3 + $0xd0] sm:$0xff] }
  0x85   :  { %v167_v40 = vmax.f32 %v140_v36, 0.0  ;;  %vm674_vm2 = vcmp.lt.s32.totalorder %v177_v16, %v184_v19 }
  0x86   :  { %vm188_vm3 = vmand %vm670_vm1, %vm674_vm2 }
  0x8a   :  { %v582_v20 = vpop.f32.mrf.mxu0  ;;  %v142_v21 = vpop.f32.mrf.mxu1 }
  0x8b   :  { %v151_v22 = vpop.f32.mrf.mxu2  ;;  %v143_v34 = vadd.f32 %v587_v23, %v142_v21  ;;  %v175_v21 = vadd.s32 8, %v174_v62  ;;  %v295_v62 = vld [vmem:[%s881_s3 + $0x18] sm:$0xff] }
  0x8c   :  { %v152_v25 = vadd.f32 %v587_v23, %v151_v22  ;;  %v222_v22 = vld [vmem:[%s880_s2 + $0x38] sm:$0xff] }
  0x8d   :  { %v168_v39 = vmax.f32 %v143_v34, 0.0  ;;  %276 = vmatpush.msra.mxu3 %v222_v22  ;;  %v219_v34 = vld [vmem:[%s880_s2 + $0x20] sm:$0xff]  ;;  %v179_v36 = vmul.u32 8, %v175_v21 }
  0x8e   :  { %v171_v29 = vmax.f32 %v152_v25, 0.0  ;;  %v113_v25 = vadd.f32 %v587_v23, %v582_v20  ;;  %v438_v20 = vld [vmem:[%s880_s2 + $0xb0] sm:$0xff] }
  0x8f   :  { %vm181_vm4 = vcmp.ge.s32.totalorder %v177_v16, %v179_v36  ;;  %v374_v36 = vld [vmem:[%s882_s4 + $0x18] sm:$0xff] }
  0x92   :  { %v589_v24 = vpop.f32.mrf.mxu0  ;;  %v145_v26 = vpop.f32.mrf.mxu1 }
  0x93   :  { %v154_v27 = vpop.f32.mrf.mxu2  ;;  %v146_v31 = vadd.f32 %v587_v23, %v145_v26  ;;  %v116_v13 = vadd.f32 %v587_v23, %v589_v24  ;;  %v439_v26 = vld [vmem:[%s880_s2 + $0xb8] sm:$0xff] }
  0x94   :  { %v155_v28 = vadd.f32 %v587_v23, %v154_v27  ;;  %v221_v27 = vld [vmem:[%s880_s2 + $0x30] sm:$0xff]  ;;  %256 = vmatpush.msrb.mxu2 %v439_v26  ;;  %v448_v26 = vld [vmem:[%s881_s3 + $0x80] sm:$0xff] }
  0x95   :  { %v169_v37 = vmax.f32 %v146_v31, 0.0  ;;  %277 = vmatpush.msra.mxu3 %v221_v27  ;;  %v386_v27 = vld [vmem:[%s882_s4 + $0x78] sm:$0xff]  ;;  %v381_v31 = vld [vmem:[%s882_s4 + $0x50] sm:$0xff] }
  0x96   :  { %v172_v30 = vmax.f32 %v155_v28, 0.0  ;;  %v110_v28 = vadd.f32 %v587_v23, %v580_v18  ;;  %v220_v18 = vld [vmem:[%s880_s2 + $0x28] sm:$0xff]  ;;  %257 = vmatpush.msrb.mxu2 %v438_v20  ;;  %v383_v20 = vld [vmem:[%s882_s4 + $0x60] sm:$0xff] }
  0x97   :  { %278 = vmatpush.msra.mxu3 %v220_v18  ;;  %v379_v18 = vld [vmem:[%s882_s4 + $0x40] sm:$0xff] }
  0x98   :  { %192 = vmatpush.msrb.mxu1 %v172_v30  ;;  %v382_v30 = vld [vmem:[%s882_s4 + $0x58] sm:$0xff] }
  0x99   :  { %279 = vmatpush.msra.mxu3 %v219_v34  ;;  %v376_v34 = vld [vmem:[%s882_s4 + $0x28] sm:$0xff] }
  0x9a   :  { %v118_v32 = vpop.f32.mrf.mxu0  ;;  %v148_v33 = vpop.f32.mrf.mxu1  ;;  %193 = vmatpush.msrb.mxu1 %v171_v29  ;;  %v159_v29 = vmax.f32 %v116_v13, 0.0  ;;  %v452_v13 = vld [vmem:[%s881_s3 + $0xa0] sm:$0xff] }
  0x9b   :  { %v149_v35 = vadd.f32 %v587_v23, %v148_v33  ;;  %v119_v9 = vadd.f32 %v587_v23, %v118_v32  ;;  %v183_v32 = vadd.s32 1, %v175_v21  ;;  %v437_v33 = vld [vmem:[%s880_s2 + $0xa8] sm:$0xff] }
  0x9c   :  { %258 = vmatpush.msrb.mxu2 %v437_v33  ;;  %v377_v33 = vld [vmem:[%s882_s4 + $0x30] sm:$0xff] }
  0x9d   :  { %v170_v38 = vmax.f32 %v149_v35, 0.0  ;;  %v160_v24 = vmax.f32 %v119_v9, 0.0  ;;  %v157_v35 = vmax.f32 %v110_v28, 0.0  ;;  %v456_v9 = vld [vmem:[%s881_s3 + $0xc0] sm:$0xff]  ;;  %v385_v28 = vld [vmem:[%s882_s4 + $0x70] sm:$0xff] }
  0x9f   :  { %194 = vmatpush.msrb.mxu1 %v170_v38  ;;  %v218_v38 = vld [vmem:[%s880_s2 + $0x18] sm:$0xff] }
  0xa0   :  { %280 = vmatpush.msra.mxu3 %v218_v38 }
  0xa1   :  { %195 = vmatpush.msrb.mxu1 %v169_v37  ;;  %v185_v37 = vmul.u32 8, %v183_v32  ;;  %v380_v32 = vld [vmem:[%s882_s4 + $0x48] sm:$0xff] }
  0xa2   :  { %v121_v41 = vpop.f32.mrf.mxu0 }
  0xa3   :  { %196 = vmatpush.msrb.mxu1 %v168_v39  ;;  %v122_v4 = vadd.f32 %v587_v23, %v121_v41  ;;  %v474_v39 = vmov 1.0   ;;  %vm187_vm5 = vcmp.lt.s32.totalorder %v177_v16, %v185_v37  ;;  %v216_v41 = vld [vmem:[%s880_s2 + $0x8] sm:$0xff]  ;;  %v471_v37 = vld [vmem:[%s879_s5 + $0x2] ss:$0 sm:$0xff] }
  0xa4   :  { %vm189_vm6 = vmand %vm181_vm4, %vm187_vm5 }
  0xa5   :  { %197 = vmatpush.msrb.mxu1 %v167_v40  ;;  %v161_v14 = vmax.f32 %v122_v4, 0.0  ;;  %v217_v40 = vld [vmem:[%s880_s2 + $0x10] sm:$0xff]  ;;  %v461_v4 = vld [vmem:[%s881_s3 + $0xe8] sm:$0xff] }
  0xa6   :  { %281 = vmatpush.msra.mxu3 %v217_v40 }
  0xa8   :  { %282 = vmatpush.msra.mxu3 %v216_v41  ;;  %v373_v41 = vld [vmem:[%s882_s4 + $0x10] sm:$0xff] }
  0xaa   :  { %v124_v42 = vpop.f32.mrf.mxu0 }
  0xab   :  { %v125_v0 = vadd.f32 %v587_v23, %v124_v42  ;;  %v436_v42 = vld [vmem:[%s880_s2 + $0xa0] sm:$0xff] }
  0xac   :  { %259 = vmatpush.msrb.mxu2 %v436_v42  ;;  %v372_v42 = vld [vmem:[%s882_s4 + $0x8] sm:$0xff] }
  0xad   :  { %v162_v10 = vmax.f32 %v125_v0, 0.0  ;;  %v293_v0 = vld [vmem:[%s881_s3 + $0x8] sm:$0xff] }
  0xb2   :  { %v127_v43 = vpop.f32.mrf.mxu0 }
  0xb3   :  { %v128_v59 = vadd.f32 %v587_v23, %v127_v43  ;;  %v215_v43 = vld [vmem:[%s880_s2] sm:$0xff] }
  0xb4   :  { %283 = vmatpush.msra.mxu3 %v215_v43  ;;  %v371_v43 = vld [vmem:[%s882_s4] sm:$0xff] }
  0xb5   :  { %v163_v5 = vmax.f32 %v128_v59, 0.0  ;;  %v298_v59 = vld [vmem:[%s881_s3 + $0x30] sm:$0xff] }
  0xb6   :  { %389 = vmatpush.msrb.mxu3 %v386_v27 }
  0xb8   :  { %390 = vmatpush.msrb.mxu3 %v385_v28 }
  0xba   :  { %v130_v44 = vpop.f32.mrf.mxu0 }
  0xbb   :  { %v131_v55 = vadd.f32 %v587_v23, %v130_v44  ;;  %v435_v44 = vld [vmem:[%s880_s2 + $0x98] sm:$0xff] }
  0xbc   :  { %260 = vmatpush.msrb.mxu2 %v435_v44  ;;  %v472_v44 = vld [vmem:[%s879_s5 + $0x3] ss:$0 sm:$0xff] }
  0xbd   :  { %v164_v1 = vmax.f32 %v131_v55, 0.0  ;;  %v300_v55 = vld [vmem:[%s881_s3 + $0x40] sm:$0xff] }
  0xc2   :  { %v133_v45 = vpop.f32.mrf.mxu0 }
  0xc3   :  { %v134_v49 = vadd.f32 %v587_v23, %v133_v45  ;;  %v434_v45 = vld [vmem:[%s880_s2 + $0x90] sm:$0xff] }
  0xc4   :  { %261 = vmatpush.msrb.mxu2 %v434_v45 }
  0xc5   :  { %v165_v60 = vmax.f32 %v134_v49, 0.0  ;;  %v306_v49 = vld [vmem:[%s881_s3 + $0x70] sm:$0xff] }
  0xca   :  { %v136_v46 = vpop.f32.mrf.mxu0 }
  0xcb   :  { %v137_v50 = vadd.f32 %v587_v23, %v136_v46  ;;  %v158_v23 = vmax.f32 %v113_v25, 0.0  ;;  %v433_v46 = vld [vmem:[%s880_s2 + $0x88] sm:$0xff]  ;;  %v450_v25 = vld [vmem:[%s881_s3 + $0x90] sm:$0xff] }
  0xcc   :  { %262 = vmatpush.msrb.mxu2 %v433_v46 }
  0xcd   :  { %v166_v56 = vmax.f32 %v137_v50, 0.0  ;;  %v305_v50 = vld [vmem:[%s881_s3 + $0x68] sm:$0xff] }
  0xce   :  { %263 = vmatpush.msrb.mxu2 %v432_v47 }
  0xcf   :  { %198 = vmatpush.msrb.mxu1 %v166_v56  ;;  %v299_v56 = vld [vmem:[%s881_s3 + $0x38] sm:$0xff] }
  0xd0   :  { %350 = vmatpush.msra.mxu2 %v463_v2 }
  0xd1   :  { %199 = vmatpush.msrb.mxu1 %v165_v60  ;;  %v297_v60 = vld [vmem:[%s881_s3 + $0x28] sm:$0xff] }
  0xd2   :  { %351 = vmatpush.msra.mxu2 %v462_v3 }
  0xd3   :  { %200 = vmatpush.msrb.mxu1 %v164_v1  ;;  %v292_v1 = vld [vmem:[%s881_s3] sm:$0xff] }
  0xd4   :  { %352 = vmatpush.msra.mxu2 %v461_v4 }
  0xd5   :  { %201 = vmatpush.msrb.mxu1 %v163_v5  ;;  %v460_v5 = vld [vmem:[%s881_s3 + $0xe0] sm:$0xff] }
  0xd6   :  { %353 = vmatpush.msra.mxu2 %v460_v5 }
  0xd7   :  { %202 = vmatpush.msrb.mxu1 %v162_v10  ;;  %v455_v10 = vld [vmem:[%s881_s3 + $0xb8] sm:$0xff] }
  0xd8   :  { %354 = vmatpush.msra.mxu2 %v459_v6 }
  0xd9   :  { %203 = vmatpush.msrb.mxu1 %v161_v14  ;;  %v451_v14 = vld [vmem:[%s881_s3 + $0x98] sm:$0xff] }
  0xda   :  { %355 = vmatpush.msra.mxu2 %v458_v7 }
  0xdb   :  { %204 = vmatpush.msrb.mxu1 %v160_v24  ;;  %v449_v24 = vld [vmem:[%s881_s3 + $0x88] sm:$0xff] }
  0xdc   :  { %356 = vmatpush.msra.mxu2 %v457_v8 }
  0xdd   :  { %205 = vmatpush.msrb.mxu1 %v159_v29  ;;  %v384_v29 = vld [vmem:[%s882_s4 + $0x68] sm:$0xff] }
  0xde   :  { %357 = vmatpush.msra.mxu2 %v456_v9  ;;  %391 = vmatpush.msrb.mxu3 %v384_v29 }
  0xdf   :  { %206 = vmatpush.msrb.mxu1 %v158_v23  ;;  %v378_v23 = vld [vmem:[%s882_s4 + $0x38] sm:$0xff] }
  0xe0   :  { %358 = vmatpush.msra.mxu2 %v455_v10  ;;  %392 = vmatpush.msrb.mxu3 %v383_v20 }
  0xe1   :  { %207 = vmatpush.msrb.mxu1 %v157_v35  ;;  %v375_v35 = vld [vmem:[%s882_s4 + $0x20] sm:$0xff] }
  0xe2   :  { %430 = vmatmul.msk.f32.vlgmr.msrb.gmra.mxu1 %vm188_vm3, %v474_v39  ;;  %359 = vmatpush.msra.mxu2 %v454_v11 }
  0xe3   :  { %310 = vmatpush.msra.mxu1 %v307_v48  ;;  %393 = vmatpush.msrb.mxu3 %v382_v30  ;;  %v473_v48 = vld [vmem:[%s879_s5 + $0x4] ss:$0 sm:$0xff] }
  0xe4   :  { %360 = vmatpush.msra.mxu2 %v453_v12 }
  0xe5   :  { %311 = vmatpush.msra.mxu1 %v306_v49  ;;  %394 = vmatpush.msrb.mxu3 %v381_v31 }
  0xe6   :  { %361 = vmatpush.msra.mxu2 %v452_v13 }
  0xe7   :  { %312 = vmatpush.msra.mxu1 %v305_v50  ;;  %395 = vmatpush.msrb.mxu3 %v380_v32 }
  0xe8   :  { %362 = vmatpush.msra.mxu2 %v451_v14 }
  0xe9   :  { %313 = vmatpush.msra.mxu1 %v304_v51  ;;  %396 = vmatpush.msrb.mxu3 %v379_v18 }
  0xea   :  { %431 = vmatmul.msk.f32.gmra.mxu1 %vm189_vm6, %v474_v39  ;;  %363 = vmatpush.msra.mxu2 %v450_v25 }
  0xeb   :  { %314 = vmatpush.msra.mxu1 %v303_v52  ;;  %397 = vmatpush.msrb.mxu3 %v378_v23 }
  0xec   :  { %364 = vmatpush.msra.mxu2 %v449_v24 }
  0xed   :  { %315 = vmatpush.msra.mxu1 %v302_v53  ;;  %398 = vmatpush.msrb.mxu3 %v377_v33 }
  0xee   :  { %365 = vmatpush.msra.mxu2 %v448_v26 }
  0xef   :  { %316 = vmatpush.msra.mxu1 %v301_v54  ;;  %399 = vmatpush.msrb.mxu3 %v376_v34 }
  0xf1   :  { %317 = vmatpush.msra.mxu1 %v300_v55  ;;  %400 = vmatpush.msrb.mxu3 %v375_v35 }
  0xf3   :  { %318 = vmatpush.msra.mxu1 %v299_v56  ;;  %401 = vmatpush.msrb.mxu3 %v374_v36 }
  0xf5   :  { %319 = vmatpush.msra.mxu1 %v298_v59  ;;  %402 = vmatpush.msrb.mxu3 %v373_v41 }
  0xf7   :  { %320 = vmatpush.msra.mxu1 %v297_v60  ;;  %403 = vmatpush.msrb.mxu3 %v372_v42 }
  0xf9   :  { %321 = vmatpush.msra.mxu1 %v296_v61  ;;  %404 = vmatpush.msrb.mxu3 %v371_v43 }
  0xfb   :  { %322 = vmatpush.msra.mxu1 %v295_v62 }
  0xfd   :  { %323 = vmatpush.msra.mxu1 %v294_v63 }
  0xff   :  { %324 = vmatpush.msra.mxu1 %v293_v0 }
 0x101   :  { %325 = vmatpush.msra.mxu1 %v292_v1 }
 0x15f   :  { %v209_v57 = vpop.f32.mrf.mxu1 }
 0x160   :  { %284 = vmatmul.f32.vlgmr.msra.gmra.mxu3 %v209_v57 }
 0x167   :  { %v212_v58 = vpop.f32.mrf.mxu1 }
 0x168   :  { %264 = vmatmul.f32.vlgmr.msrb.gmra.mxu2 %v212_v58 }
 0x1e3   :  { %v285_v16 = vpop.f32.mrf.mxu3 }
 0x1eb   :  { %v265_v17 = vpop.f32.mrf.mxu2 }
 0x1ec   :  { %v286_v19 = vadd.f32 %v285_v16, %v265_v17 }
 0x1ee   :  { %v290_v21 = vadd.f32 %v470_v15, %v286_v19 }
 0x1f0   :  { %v291_v22 = vmax.f32 %v290_v21, 0.0 }
 0x1f2   :  { %326 = vmatmul.f32.vlgmr.msra.gmra.mxu1 %v291_v22 }
 0x26f   :  { %v327_v38 = vpop.f32.mrf.mxu1 }
 0x270   :  { %v328_v39 = vadd.f32 %v471_v37, %v327_v38 }
 0x272   :  { %v330_v40 = vmax.f32 %v328_v39, 0.0 }
 0x274   :  { %366 = vmatmul.f32.vlgmr.msra.gmra.mxu2 %v330_v40 }
 0x2f7   :  { %v367_v45 = vpop.f32.mrf.mxu2 }
 0x2f8   :  { %v368_v46 = vadd.f32 %v472_v44, %v367_v45 }
 0x2fa   :  { %v370_v47 = vmax.f32 %v368_v46, 0.0 }
 0x2fc   :  { %405 = vmatmul.f32.vlgmr.msrb.gmra.mxu3 %v370_v47 }
 0x37f   :  { %v406_v49 = vpop.f32.mrf.mxu3 }
 0x380   :  { %v407_v50 = vadd.f32 %v473_v48, %v406_v49 }
 0x382   :  { %409 = vst [vmem:[%s883_s6] sm:$0xff] %v407_v50 }

</bundles_post_ra>
